<compile_context>
chip_gen: v7x
topology: tpu7x:2x2x1
jax: 0.10.0
libtpu: 0.0.40
codegen_flags: <defaults>
</compile_context>

<pallas_src>
import functools

import jax
import jax.numpy as jnp
from jax.experimental import pallas as pl
from jax.experimental.pallas import tpu as pltpu


# ----------------------------- config ---------------------------------------
class Config:
    use_gauge_conv = True
    channels = 4
    rotation_group_size = 8          # rotations are a no-op (see note above)
    image_size = 16
    patch_size = 4
    num_patches = (image_size // patch_size) ** 2   # 16
    d_model = 32
    theta_learnable = True
    theta_nc_initial = 0.1
    gauge_symmetry_dim = 8
    quantum_correction = 0.01
    dropout = 0.1                    # identity at inference
    # TODO(synk): dropout is treated as identity (eval mode); no RNG mask.


# ----------------------------- fused Pallas kernel ---------------------------
def _fused_kernel(xph_ref,                        # (BB*Np, 144) bf16 per-patch halo windows
                  noise_ref,                      # (BB, Np+1, D) f32
                  wcp_ref,                        # (144, 128) bf16 conv folded with patchify
                  wp_ref,                         # (128, D)   bf16 patch projection
                  cls0_ref,                       # (1, D)   cls_token + pos_emb[0]
                  posr_ref,                       # (Np, D)  pos_emb[1:] + proj bias
                  tw1_ref, tb1_ref, tw2_ref, tb2_ref, tsc_ref,   # theta network
                  gt_ref, g_ref,                  # gauge params (D,G) / (G,D)
                  qw1_ref, qb1_ref, qw2_ref, qb2_ref,            # quantum MLP
                  out_ref,                        # (BB, Np+1, D) f32
                  *, BB, Np, D, qcorr):
    f32 = jnp.float32
    bf16 = jnp.bfloat16
    N = Np + 1

    # Stage 1+2: gauge conv (C8 mean == one 3x3 conv) fused with the patchify.
    # Rows = (b, patch); lanes of the result = (py, px, c2) = 128 (lane-dense),
    # so the downstream projection is a plain dense GEMM with no relayout.
    pm = jnp.dot(xph_ref[...], wcp_ref[...], preferred_element_type=f32)
    # TODO(synk): torch nn.GELU() is exact erf; tanh approximation is used here
    # (EUP-friendly per review; erf lowering availability in Mosaic is uncertain).
    pm = jax.nn.gelu(pm, approximate=True)

    # Patch projection (Conv2d k=stride=P) as a GEMM; conv bias + positional
    # embedding are pre-folded into posr on the host.
    xp = jnp.dot(pm.astype(bf16), wp_ref[...], preferred_element_type=f32)   # (BB*Np, D)
    xp = (xp.reshape(BB, Np, D) + posr_ref[...][None, :, :]).reshape(BB * Np, D)
    xc = jnp.broadcast_to(cls0_ref[...], (BB, D))          # cls_token + pos_emb[0]

    nz = noise_ref[...]
    noise_c = nz[:, 0, :]                                   # (BB, D)
    noise_p = nz[:, 1:, :].reshape(BB * Np, D)              # (BB*Np, D)
    t_scale = tsc_ref[...] * 0.001                          # (1, 1)

    # Stage 3: theta network -> sigmoid gate -> noncommutative noise term.
    def theta_noise(rows, noise_rows):
        h = jnp.dot(rows.astype(bf16), tw1_ref[...], preferred_element_type=f32)
        h = jax.nn.gelu(h + tb1_ref[...], approximate=True)
        # final Linear(D//4 -> 1) on the VPU (mul + lane-sum), not a 1-lane MXU pass
        t = jnp.sum(h * tw2_ref[...], axis=-1, keepdims=True) + tb2_ref[...]
        return rows + (jax.nn.sigmoid(t) * t_scale) * noise_rows

    xc = theta_noise(xc, noise_c)
    xp = theta_noise(xp, noise_p)
    # TODO(synk): theta_learnable=False (fixed theta) branch unused by this config.

    # Stage 4: gauge correction from the per-sample token mean (CLS included),
    # applied after the theta-noise injection, matching the reference ordering.
    xmean = (xc + jnp.sum(xp.reshape(BB, Np, D), axis=1)) * (1.0 / N)
    ge = jnp.dot(xmean.astype(bf16), gt_ref[...], preferred_element_type=f32)   # (BB, G)
    gc = jnp.dot(ge.astype(bf16), g_ref[...], preferred_element_type=f32) * qcorr
    xc = xc + gc
    xp = (xp.reshape(BB, Np, D) + gc[:, None, :]).reshape(BB * Np, D)

    # Stage 5: quantum MLP residual correction.
    def quantum(rows):
        q = jnp.dot(rows.astype(bf16), qw1_ref[...], preferred_element_type=f32)
        q = jax.nn.gelu(q + qb1_ref[...], approximate=True)
        q = jnp.dot(q.astype(bf16), qw2_ref[...], preferred_element_type=f32) + qb2_ref[...]
        return rows + q * qcorr

    # Single fused output: CLS at token 0, patches at 1..Np (no host concat).
    # TODO(synk): stores use 32 of 128 lanes (D=32); a 4-tokens-per-row packed
    # layout would be fully lane-dense but needs a sublane->lane reshape.
    out_ref[:, 0:1, :] = quantum(xc)[:, None, :]
    out_ref[:, 1:, :] = quantum(xp).reshape(BB, Np, D)


# ----------------------------- wrapper ---------------------------------------
def _largest_divisor_leq(n, cap):
    cap = max(1, min(cap, n))
    for d in range(cap, 0, -1):
        if n % d == 0:
            return d
    return 1


def nkat_patch_embedding_forward(x, params, noise, cfg):
    """Full forward pass of NKATEnhancedPatchEmbedding (inference)."""
    B, C, H, W = x.shape
    P = cfg.patch_size
    Hp, Wp = H // P, W // P
    Np = Hp * Wp
    N = Np + 1
    D = cfg.d_model
    D4 = D // 4
    G = cfg.gauge_symmetry_dim
    C2 = C * 2
    KH = P + 2                       # patch window + 1px halo for the 3x3 conv
    Kc = KH * KH * C                 # 144 lanes per patch window
    Pc = P * P * C2                  # 128 conv-output lanes per patch
    bf16 = jnp.bfloat16

    assert cfg.use_gauge_conv
    # TODO(synk): use_gauge_conv=False branch is unused by this config and not implemented.

    # ---- host-side prep (tiny; fused by XLA under jit) -----------------------
    # Per-patch halo windows in bf16 (~2.25x input bytes, vs 9x for a full im2col).
    xn = jnp.transpose(x, (0, 2, 3, 1))                              # NHWC
    xpad = jnp.pad(xn, ((0, 0), (1, 1), (1, 1), (0, 0)))
    xph = jnp.stack([xpad[:, P * ph:P * ph + KH, P * pw:P * pw + KH, :]
                     for ph in range(Hp) for pw in range(Wp)], axis=1)
    xph = xph.reshape(B * Np, Kc).astype(bf16)

    # conv filter folded with the patch extraction: (i,j,c) -> (py,px,c2).
    # C8 "rotations" are a no-op in the reference, so the group mean == one conv.
    wf = jnp.transpose(params["gauge_filter"], (2, 3, 1, 0))         # (ky,kx,C,C2)
    wcp = jnp.zeros((KH, KH, C, P, P, C2), jnp.float32)
    for py in range(P):
        for px in range(P):
            wcp = wcp.at[py:py + 3, px:px + 3, :, py, px, :].add(wf)
    wcp = wcp.reshape(Kc, Pc).astype(bf16)

    wp = jnp.transpose(params["proj_w"], (2, 3, 1, 0)).reshape(Pc, D).astype(bf16)
    posr = params["pos_emb"][0, 1:, :] + params["proj_b"][None, :]   # (Np, D)
    cls0 = (params["cls_token"][0, 0, :] + params["pos_emb"][0, 0, :]).reshape(1, D)

    # ---- batch-tiled grid (>= 2 "parallel" steps whenever B > 1) -------------
    BB = _largest_divisor_leq(B, min(16, max(1, B // 2)))
    steps = B // BB

    kernel = functools.partial(_fused_kernel, BB=BB, Np=Np, D=D,
                               qcorr=cfg.quantum_correction)

    rows_map = lambda i: (i, 0)
    batch_map = lambda i: (i, 0, 0)
    const_map = lambda i: (0, 0)

    in_specs = [
        pl.BlockSpec((BB * Np, Kc), rows_map),    # xph (per-patch halo windows)
        pl.BlockSpec((BB, N, D), batch_map),      # noise
        pl.BlockSpec((Kc, Pc), const_map),        # wcp
        pl.BlockSpec((Pc, D), const_map),         # wp
        pl.BlockSpec((1, D), const_map),          # cls0
        pl.BlockSpec((Np, D), const_map),         # posr
        pl.BlockSpec((D, D4), const_map),         # theta w1
        pl.BlockSpec((1, D4), const_map),         # theta b1
        pl.BlockSpec((1, D4), const_map),         # theta w2 (row)
        pl.BlockSpec((1, 1), const_map),          # theta b2
        pl.BlockSpec((1, 1), const_map),          # theta scale
        pl.BlockSpec((D, G), const_map),          # gauge_params^T
        pl.BlockSpec((G, D), const_map),          # gauge_params
        pl.BlockSpec((D, D), const_map),          # quantum w1
        pl.BlockSpec((1, D), const_map),          # quantum b1
        pl.BlockSpec((D, D), const_map),          # quantum w2
        pl.BlockSpec((1, D), const_map),          # quantum b2
    ]

    flops = (2 * B * Np * (Kc * Pc + Pc * D)
             + 2 * B * N * (D * D4 + 2 * D * D)
             + 4 * B * D * G)
    transcendentals = B * Np * Pc + B * N * (D4 + 1 + D)
    bytes_accessed = (B * Np * Kc * 2 + B * N * D * 4 + B * N * D * 4
                      + (Kc * Pc + Pc * D + D * D4 + 2 * G * D + 2 * D * D) * 2
                      + (Np * D + 6 * D + 4) * 4)

    out = pl.pallas_call(
        kernel,
        out_shape=jax.ShapeDtypeStruct((B, N, D), jnp.float32),
        grid=(steps,),
        in_specs=in_specs,
        out_specs=pl.BlockSpec((BB, N, D), batch_map),
        compiler_params=pltpu.CompilerParams(
            dimension_semantics=("parallel",),
            vmem_limit_bytes=32 * 1024 * 1024),
        cost_estimate=pl.CostEstimate(flops=flops,
                                      transcendentals=transcendentals,
                                      bytes_accessed=bytes_accessed),
    )(xph, noise,
      wcp, wp, cls0, posr,
      params["theta_w1"].astype(bf16), params["theta_b1"],
      params["theta_w2"], params["theta_b2"], params["theta_scale"],
      params["gauge_params"].T.astype(bf16), params["gauge_params"].astype(bf16),
      params["quant_w1"].astype(bf16), params["quant_b1"],
      params["quant_w2"].astype(bf16), params["quant_b2"])
    return out                                                        # (B, N, D)


# ----------------------------- pure-JAX reference -----------------------------
def _reference_forward(x, params, noise, cfg):
    """Tolerance reference (same tanh-GELU / deterministic noise as the kernel)."""
    B = x.shape[0]
    P, D = cfg.patch_size, cfg.d_model
    y = jax.lax.conv_general_dilated(
        x, params["gauge_filter"], window_strides=(1, 1), padding="SAME",
        dimension_numbers=("NCHW", "OIHW", "NCHW"))
    y = jax.nn.gelu(y, approximate=True)
    z = jax.lax.conv_general_dilated(
        y, params["proj_w"], window_strides=(P, P), padding="VALID",
        dimension_numbers=("NCHW", "OIHW", "NCHW"))
    z = z + params["proj_b"][None, :, None, None]
    tokens = z.reshape(B, D, -1).transpose(0, 2, 1)
    cls = jnp.broadcast_to(params["cls_token"], (B, 1, D))
    xt = jnp.concatenate([cls, tokens], axis=1) + params["pos_emb"]
    h = jax.nn.gelu(xt @ params["theta_w1"] + params["theta_b1"], approximate=True)
    t = jax.nn.sigmoid(jnp.sum(h * params["theta_w2"], axis=-1, keepdims=True)
                       + params["theta_b2"]) * params["theta_scale"]
    xt = xt + t * noise * 0.001
    ge = jnp.einsum("gd,bd->bg", params["gauge_params"], xt.mean(axis=1))
    gc = jnp.einsum("bg,gd->bd", ge, params["gauge_params"])
    xt = xt + gc[:, None, :] * cfg.quantum_correction
    q = jax.nn.gelu(xt @ params["quant_w1"] + params["quant_b1"], approximate=True)
    q = q @ params["quant_w2"] + params["quant_b2"]
    return xt + q * cfg.quantum_correction


# ----------------------------- parameter init --------------------------------
def init_params(cfg, key):
    ks = jax.random.split(key, 10)
    C, D, P = cfg.channels, cfg.d_model, cfg.patch_size
    C2, D4, G = C * 2, cfg.d_model // 4, cfg.gauge_symmetry_dim
    Np = cfg.num_patches
    n = jax.random.normal
    return {
        "gauge_filter": n(ks[0], (C2, C, 3, 3), jnp.float32) * 0.02,
        "proj_w":       n(ks[1], (D, C2, P, P), jnp.float32) * 0.02,
        "proj_b":       n(ks[2], (D,), jnp.float32) * 0.02,
        "pos_emb":      n(ks[3], (1, Np + 1, D), jnp.float32) * 0.02,
        "cls_token":    n(ks[4], (1, 1, D), jnp.float32) * 0.02,
        # theta network (weights stored (in, out); w2 stored as a row vector)
        "theta_w1":     n(ks[5], (D, D4), jnp.float32) * 0.02,
        "theta_b1":     jnp.zeros((1, D4), jnp.float32),
        "theta_w2":     n(ks[6], (1, D4), jnp.float32) * 0.02,
        "theta_b2":     jnp.zeros((1, 1), jnp.float32),
        "theta_scale":  jnp.full((1, 1), cfg.theta_nc_initial, jnp.float32),
        "gauge_params": n(ks[7], (G, D), jnp.float32) * 0.01,
        "quant_w1":     n(ks[8], (D, D), jnp.float32) * 0.02,
        "quant_b1":     jnp.zeros((1, D), jnp.float32),
        "quant_w2":     n(ks[9], (D, D), jnp.float32) * 0.02,
        "quant_b2":     jnp.zeros((1, D), jnp.float32),
    }


# ----------------------------- main -------------------------------------------
if __name__ == "__main__":
    cfg = Config()
    key = jax.random.PRNGKey(0)
    kx, kp, kn = jax.random.split(key, 3)

    B = 2
    x = jax.random.normal(kx, (B, cfg.channels, cfg.image_size, cfg.image_size),
                          jnp.float32)                        # NCHW input
    params = init_params(cfg, kp)
    # deterministic stand-in for torch.randn_like(x) inside forward
    noise = jax.random.normal(kn, (B, cfg.num_patches + 1, cfg.d_model),
                              jnp.float32)

    fwd = jax.jit(lambda xx, pp, nn: nkat_patch_embedding_forward(xx, pp, nn, cfg))
    out = jax.block_until_ready(fwd(x, params, noise))
    assert out.shape == (B, cfg.num_patches + 1, cfg.d_model)
    assert bool(jnp.all(jnp.isfinite(out)))

    ref = _reference_forward(x, params, noise, cfg)
    assert float(jnp.max(jnp.abs(out - ref))) < 3e-2, "kernel/reference mismatch"
    print("KERNEL_OK")
</pallas_src>

<mosaic_0001>
module attributes {stable_mosaic.version = 11 : i64} {
  func.func @_fused_kernel(%arg0: i32, %arg1: memref<16x144xbf16, #tpu.memory_space<vmem>>, %arg2: memref<1x17x32xf32, #tpu.memory_space<vmem>>, %arg3: memref<144x128xbf16, #tpu.memory_space<vmem>>, %arg4: memref<128x32xbf16, #tpu.memory_space<vmem>>, %arg5: memref<1x32xf32, #tpu.memory_space<vmem>>, %arg6: memref<16x32xf32, #tpu.memory_space<vmem>>, %arg7: memref<32x8xbf16, #tpu.memory_space<vmem>>, %arg8: memref<1x8xf32, #tpu.memory_space<vmem>>, %arg9: memref<1x8xf32, #tpu.memory_space<vmem>>, %arg10: memref<1x1xf32, #tpu.memory_space<vmem>>, %arg11: memref<1x1xf32, #tpu.memory_space<vmem>>, %arg12: memref<32x8xbf16, #tpu.memory_space<vmem>>, %arg13: memref<8x32xbf16, #tpu.memory_space<vmem>>, %arg14: memref<32x32xbf16, #tpu.memory_space<vmem>>, %arg15: memref<1x32xf32, #tpu.memory_space<vmem>>, %arg16: memref<32x32xbf16, #tpu.memory_space<vmem>>, %arg17: memref<1x32xf32, #tpu.memory_space<vmem>>, %arg18: memref<1x17x32xf32, #tpu.memory_space<vmem>>) attributes {dimension_semantics = [#tpu.dimension_semantics<parallel>], iteration_bounds = array<i64: 2>, scalar_prefetch = 0 : i64, scratch_operands = 0 : i64, tpu.core_type = #tpu.core_type<tc>, window_params = [{transform_indices = @transform_0, window_bounds = array<i64: 16, 144>}, {transform_indices = @transform_1, window_bounds = array<i64: 1, 17, 32>}, {pipeline_mode = #tpu.pipeline_mode<synchronous>, transform_indices = @transform_2, window_bounds = array<i64: 144, 128>}, {pipeline_mode = #tpu.pipeline_mode<synchronous>, transform_indices = @transform_3, window_bounds = array<i64: 128, 32>}, {pipeline_mode = #tpu.pipeline_mode<synchronous>, transform_indices = @transform_4, window_bounds = array<i64: 1, 32>}, {pipeline_mode = #tpu.pipeline_mode<synchronous>, transform_indices = @transform_5, window_bounds = array<i64: 16, 32>}, {pipeline_mode = #tpu.pipeline_mode<synchronous>, transform_indices = @transform_6, window_bounds = array<i64: 32, 8>}, {pipeline_mode = #tpu.pipeline_mode<synchronous>, transform_indices = @transform_7, window_bounds = array<i64: 1, 8>}, {pipeline_mode = #tpu.pipeline_mode<synchronous>, transform_indices = @transform_8, window_bounds = array<i64: 1, 8>}, {pipeline_mode = #tpu.pipeline_mode<synchronous>, transform_indices = @transform_9, window_bounds = array<i64: 1, 1>}, {pipeline_mode = #tpu.pipeline_mode<synchronous>, transform_indices = @transform_10, window_bounds = array<i64: 1, 1>}, {pipeline_mode = #tpu.pipeline_mode<synchronous>, transform_indices = @transform_11, window_bounds = array<i64: 32, 8>}, {pipeline_mode = #tpu.pipeline_mode<synchronous>, transform_indices = @transform_12, window_bounds = array<i64: 8, 32>}, {pipeline_mode = #tpu.pipeline_mode<synchronous>, transform_indices = @transform_13, window_bounds = array<i64: 32, 32>}, {pipeline_mode = #tpu.pipeline_mode<synchronous>, transform_indices = @transform_14, window_bounds = array<i64: 1, 32>}, {pipeline_mode = #tpu.pipeline_mode<synchronous>, transform_indices = @transform_15, window_bounds = array<i64: 32, 32>}, {pipeline_mode = #tpu.pipeline_mode<synchronous>, transform_indices = @transform_16, window_bounds = array<i64: 1, 32>}, {transform_indices = @transform_17, window_bounds = array<i64: 1, 17, 32>}]} {
    %c0 = arith.constant 0 : index
    %c0_0 = arith.constant 0 : index
    %0 = vector.load %arg1[%c0, %c0_0] : memref<16x144xbf16, #tpu.memory_space<vmem>>, vector<16x144xbf16>
    %c0_1 = arith.constant 0 : index
    %c0_2 = arith.constant 0 : index
    %1 = vector.load %arg3[%c0_1, %c0_2] : memref<144x128xbf16, #tpu.memory_space<vmem>>, vector<144x128xbf16>
    %cst = arith.constant dense<0.000000e+00> : vector<16x128xf32>
    %2 = tpu.matmul %0, %1, %cst {dimension_numbers = #tpu.dot_dimension_numbers<[1], [0], [0], [1], [0, 0, 1, 1], [], []>} : vector<16x144xbf16>, vector<144x128xbf16>, vector<16x128xf32> -> vector<16x128xf32>
    %3 = arith.mulf %2, %2 : vector<16x128xf32>
    %4 = arith.mulf %2, %3 : vector<16x128xf32>
    %cst_3 = arith.constant 4.471500e-02 : f32
    %5 = vector.broadcast %cst_3 : f32 to vector<16x128xf32>
    %6 = arith.mulf %5, %4 : vector<16x128xf32>
    %7 = arith.addf %2, %6 : vector<16x128xf32>
    %cst_4 = arith.constant 0.797884583 : f32
    %8 = vector.broadcast %cst_4 : f32 to vector<16x128xf32>
    %9 = arith.mulf %8, %7 : vector<16x128xf32>
    %10 = math.tanh %9 : vector<16x128xf32>
    %cst_5 = arith.constant 1.000000e+00 : f32
    %11 = vector.broadcast %cst_5 : f32 to vector<16x128xf32>
    %12 = arith.addf %11, %10 : vector<16x128xf32>
    %cst_6 = arith.constant 5.000000e-01 : f32
    %13 = vector.broadcast %cst_6 : f32 to vector<16x128xf32>
    %14 = arith.mulf %13, %12 : vector<16x128xf32>
    %15 = arith.mulf %2, %14 : vector<16x128xf32>
    %16 = arith.truncf %15 : vector<16x128xf32> to vector<16x128xbf16>
    %c0_7 = arith.constant 0 : index
    %c0_8 = arith.constant 0 : index
    %17 = vector.load %arg4[%c0_7, %c0_8] : memref<128x32xbf16, #tpu.memory_space<vmem>>, vector<128x32xbf16>
    %cst_9 = arith.constant dense<0.000000e+00> : vector<16x32xf32>
    %18 = tpu.matmul %16, %17, %cst_9 {dimension_numbers = #tpu.dot_dimension_numbers<[1], [0], [0], [1], [0, 0, 1, 1], [], []>} : vector<16x128xbf16>, vector<128x32xbf16>, vector<16x32xf32> -> vector<16x32xf32>
    %19 = vector.shape_cast %18 : vector<16x32xf32> to vector<1x16x32xf32>
    %c0_10 = arith.constant 0 : index
    %c0_11 = arith.constant 0 : index
    %20 = vector.load %arg6[%c0_10, %c0_11] : memref<16x32xf32, #tpu.memory_space<vmem>>, vector<16x32xf32>
    %21 = vector.shape_cast %20 : vector<16x32xf32> to vector<1x16x32xf32>
    %22 = arith.addf %19, %21 : vector<1x16x32xf32>
    %23 = vector.shape_cast %22 : vector<1x16x32xf32> to vector<16x32xf32>
    %c0_12 = arith.constant 0 : index
    %c0_13 = arith.constant 0 : index
    %24 = vector.load %arg5[%c0_12, %c0_13] : memref<1x32xf32, #tpu.memory_space<vmem>>, vector<1x32xf32>
    %c0_14 = arith.constant 0 : index
    %c0_15 = arith.constant 0 : index
    %c0_16 = arith.constant 0 : index
    %25 = vector.load %arg2[%c0_14, %c0_15, %c0_16] : memref<1x17x32xf32, #tpu.memory_space<vmem>>, vector<1x17x32xf32>
    %26 = vector.extract_strided_slice %25 {offsets = [0, 0, 0], sizes = [1, 1, 32], strides = [1, 1, 1]} : vector<1x17x32xf32> to vector<1x1x32xf32>
    %27 = vector.shape_cast %26 : vector<1x1x32xf32> to vector<1x32xf32>
    %28 = vector.extract_strided_slice %25 {offsets = [0, 1, 0], sizes = [1, 16, 32], strides = [1, 1, 1]} : vector<1x17x32xf32> to vector<1x16x32xf32>
    %29 = vector.shape_cast %28 : vector<1x16x32xf32> to vector<16x32xf32>
    %c0_17 = arith.constant 0 : index
    %c0_18 = arith.constant 0 : index
    %30 = vector.load %arg11[%c0_17, %c0_18] : memref<1x1xf32, #tpu.memory_space<vmem>>, vector<1x1xf32>
    %cst_19 = arith.constant 1.000000e-03 : f32
    %31 = vector.broadcast %cst_19 : f32 to vector<1x1xf32>
    %32 = arith.mulf %30, %31 : vector<1x1xf32>
    %33 = arith.truncf %24 : vector<1x32xf32> to vector<1x32xbf16>
    %c0_20 = arith.constant 0 : index
    %c0_21 = arith.constant 0 : index
    %34 = vector.load %arg7[%c0_20, %c0_21] : memref<32x8xbf16, #tpu.memory_space<vmem>>, vector<32x8xbf16>
    %cst_22 = arith.constant dense<0.000000e+00> : vector<1x8xf32>
    %35 = tpu.matmul %33, %34, %cst_22 {dimension_numbers = #tpu.dot_dimension_numbers<[1], [0], [0], [1], [0, 0, 1, 1], [], []>} : vector<1x32xbf16>, vector<32x8xbf16>, vector<1x8xf32> -> vector<1x8xf32>
    %c0_23 = arith.constant 0 : index
    %c0_24 = arith.constant 0 : index
    %36 = vector.load %arg8[%c0_23, %c0_24] : memref<1x8xf32, #tpu.memory_space<vmem>>, vector<1x8xf32>
    %37 = arith.addf %35, %36 : vector<1x8xf32>
    %38 = arith.mulf %37, %37 : vector<1x8xf32>
    %39 = arith.mulf %37, %38 : vector<1x8xf32>
    %cst_25 = arith.constant 4.471500e-02 : f32
    %40 = vector.broadcast %cst_25 : f32 to vector<1x8xf32>
    %41 = arith.mulf %40, %39 : vector<1x8xf32>
    %42 = arith.addf %37, %41 : vector<1x8xf32>
    %cst_26 = arith.constant 0.797884583 : f32
    %43 = vector.broadcast %cst_26 : f32 to vector<1x8xf32>
    %44 = arith.mulf %43, %42 : vector<1x8xf32>
    %45 = math.tanh %44 : vector<1x8xf32>
    %cst_27 = arith.constant 1.000000e+00 : f32
    %46 = vector.broadcast %cst_27 : f32 to vector<1x8xf32>
    %47 = arith.addf %46, %45 : vector<1x8xf32>
    %cst_28 = arith.constant 5.000000e-01 : f32
    %48 = vector.broadcast %cst_28 : f32 to vector<1x8xf32>
    %49 = arith.mulf %48, %47 : vector<1x8xf32>
    %50 = arith.mulf %37, %49 : vector<1x8xf32>
    %c0_29 = arith.constant 0 : index
    %c0_30 = arith.constant 0 : index
    %51 = vector.load %arg9[%c0_29, %c0_30] : memref<1x8xf32, #tpu.memory_space<vmem>>, vector<1x8xf32>
    %52 = arith.mulf %50, %51 : vector<1x8xf32>
    %cst_31 = arith.constant dense<0.000000e+00> : vector<1xf32>
    %53 = vector.multi_reduction <add>, %52, %cst_31 [1] : vector<1x8xf32> to vector<1xf32>
    %54 = vector.shape_cast %53 : vector<1xf32> to vector<1x1xf32>
    %c0_32 = arith.constant 0 : index
    %c0_33 = arith.constant 0 : index
    %55 = vector.load %arg10[%c0_32, %c0_33] : memref<1x1xf32, #tpu.memory_space<vmem>>, vector<1x1xf32>
    %56 = arith.addf %54, %55 : vector<1x1xf32>
    %57 = arith.negf %56 : vector<1x1xf32>
    %58 = math.exp %57 : vector<1x1xf32>
    %cst_34 = arith.constant 1.000000e+00 : f32
    %59 = vector.broadcast %cst_34 : f32 to vector<1x1xf32>
    %60 = arith.addf %59, %58 : vector<1x1xf32>
    %61 = arith.divf %59, %60 : vector<1x1xf32>
    %62 = arith.mulf %61, %32 : vector<1x1xf32>
    %63 = vector.broadcast %62 : vector<1x1xf32> to vector<1x32xf32>
    %64 = arith.mulf %63, %27 : vector<1x32xf32>
    %65 = arith.addf %24, %64 : vector<1x32xf32>
    %66 = arith.truncf %23 : vector<16x32xf32> to vector<16x32xbf16>
    %c0_35 = arith.constant 0 : index
    %c0_36 = arith.constant 0 : index
    %67 = vector.load %arg7[%c0_35, %c0_36] : memref<32x8xbf16, #tpu.memory_space<vmem>>, vector<32x8xbf16>
    %cst_37 = arith.constant dense<0.000000e+00> : vector<16x8xf32>
    %68 = tpu.matmul %66, %67, %cst_37 {dimension_numbers = #tpu.dot_dimension_numbers<[1], [0], [0], [1], [0, 0, 1, 1], [], []>} : vector<16x32xbf16>, vector<32x8xbf16>, vector<16x8xf32> -> vector<16x8xf32>
    %c0_38 = arith.constant 0 : index
    %c0_39 = arith.constant 0 : index
    %69 = vector.load %arg8[%c0_38, %c0_39] : memref<1x8xf32, #tpu.memory_space<vmem>>, vector<1x8xf32>
    %70 = vector.broadcast %69 : vector<1x8xf32> to vector<16x8xf32>
    %71 = arith.addf %68, %70 : vector<16x8xf32>
    %72 = arith.mulf %71, %71 : vector<16x8xf32>
    %73 = arith.mulf %71, %72 : vector<16x8xf32>
    %cst_40 = arith.constant 4.471500e-02 : f32
    %74 = vector.broadcast %cst_40 : f32 to vector<16x8xf32>
    %75 = arith.mulf %74, %73 : vector<16x8xf32>
    %76 = arith.addf %71, %75 : vector<16x8xf32>
    %cst_41 = arith.constant 0.797884583 : f32
    %77 = vector.broadcast %cst_41 : f32 to vector<16x8xf32>
    %78 = arith.mulf %77, %76 : vector<16x8xf32>
    %79 = math.tanh %78 : vector<16x8xf32>
    %cst_42 = arith.constant 1.000000e+00 : f32
    %80 = vector.broadcast %cst_42 : f32 to vector<16x8xf32>
    %81 = arith.addf %80, %79 : vector<16x8xf32>
    %cst_43 = arith.constant 5.000000e-01 : f32
    %82 = vector.broadcast %cst_43 : f32 to vector<16x8xf32>
    %83 = arith.mulf %82, %81 : vector<16x8xf32>
    %84 = arith.mulf %71, %83 : vector<16x8xf32>
    %c0_44 = arith.constant 0 : index
    %c0_45 = arith.constant 0 : index
    %85 = vector.load %arg9[%c0_44, %c0_45] : memref<1x8xf32, #tpu.memory_space<vmem>>, vector<1x8xf32>
    %86 = vector.broadcast %85 : vector<1x8xf32> to vector<16x8xf32>
    %87 = arith.mulf %84, %86 : vector<16x8xf32>
    %cst_46 = arith.constant dense<0.000000e+00> : vector<16xf32>
    %88 = vector.multi_reduction <add>, %87, %cst_46 [1] : vector<16x8xf32> to vector<16xf32>
    %89 = vector.shape_cast %88 : vector<16xf32> to vector<16x1xf32>
    %c0_47 = arith.constant 0 : index
    %c0_48 = arith.constant 0 : index
    %90 = vector.load %arg10[%c0_47, %c0_48] : memref<1x1xf32, #tpu.memory_space<vmem>>, vector<1x1xf32>
    %91 = vector.broadcast %90 : vector<1x1xf32> to vector<16x1xf32>
    %92 = arith.addf %89, %91 : vector<16x1xf32>
    %93 = arith.negf %92 : vector<16x1xf32>
    %94 = math.exp %93 : vector<16x1xf32>
    %cst_49 = arith.constant 1.000000e+00 : f32
    %95 = vector.broadcast %cst_49 : f32 to vector<16x1xf32>
    %96 = arith.addf %95, %94 : vector<16x1xf32>
    %97 = arith.divf %95, %96 : vector<16x1xf32>
    %98 = vector.broadcast %32 : vector<1x1xf32> to vector<16x1xf32>
    %99 = arith.mulf %97, %98 : vector<16x1xf32>
    %100 = vector.broadcast %99 : vector<16x1xf32> to vector<16x32xf32>
    %101 = arith.mulf %100, %29 : vector<16x32xf32>
    %102 = arith.addf %23, %101 : vector<16x32xf32>
    %103 = vector.shape_cast %102 : vector<16x32xf32> to vector<1x16x32xf32>
    %cst_50 = arith.constant dense<0.000000e+00> : vector<1x32xf32>
    %104 = vector.multi_reduction <add>, %103, %cst_50 [1] : vector<1x16x32xf32> to vector<1x32xf32>
    %105 = arith.addf %65, %104 : vector<1x32xf32>
    %cst_51 = arith.constant 0.0588235296 : f32
    %106 = vector.broadcast %cst_51 : f32 to vector<1x32xf32>
    %107 = arith.mulf %105, %106 : vector<1x32xf32>
    %108 = arith.truncf %107 : vector<1x32xf32> to vector<1x32xbf16>
    %c0_52 = arith.constant 0 : index
    %c0_53 = arith.constant 0 : index
    %109 = vector.load %arg12[%c0_52, %c0_53] : memref<32x8xbf16, #tpu.memory_space<vmem>>, vector<32x8xbf16>
    %cst_54 = arith.constant dense<0.000000e+00> : vector<1x8xf32>
    %110 = tpu.matmul %108, %109, %cst_54 {dimension_numbers = #tpu.dot_dimension_numbers<[1], [0], [0], [1], [0, 0, 1, 1], [], []>} : vector<1x32xbf16>, vector<32x8xbf16>, vector<1x8xf32> -> vector<1x8xf32>
    %111 = arith.truncf %110 : vector<1x8xf32> to vector<1x8xbf16>
    %c0_55 = arith.constant 0 : index
    %c0_56 = arith.constant 0 : index
    %112 = vector.load %arg13[%c0_55, %c0_56] : memref<8x32xbf16, #tpu.memory_space<vmem>>, vector<8x32xbf16>
    %cst_57 = arith.constant dense<0.000000e+00> : vector<1x32xf32>
    %113 = tpu.matmul %111, %112, %cst_57 {dimension_numbers = #tpu.dot_dimension_numbers<[1], [0], [0], [1], [0, 0, 1, 1], [], []>} : vector<1x8xbf16>, vector<8x32xbf16>, vector<1x32xf32> -> vector<1x32xf32>
    %cst_58 = arith.constant 0.00999999977 : f32
    %114 = vector.broadcast %cst_58 : f32 to vector<1x32xf32>
    %115 = arith.mulf %113, %114 : vector<1x32xf32>
    %116 = arith.addf %65, %115 : vector<1x32xf32>
    %117 = vector.shape_cast %102 : vector<16x32xf32> to vector<1x16x32xf32>
    %118 = vector.shape_cast %115 : vector<1x32xf32> to vector<1x1x32xf32>
    %119 = vector.broadcast %118 : vector<1x1x32xf32> to vector<1x16x32xf32>
    %120 = arith.addf %117, %119 : vector<1x16x32xf32>
    %121 = vector.shape_cast %120 : vector<1x16x32xf32> to vector<16x32xf32>
    %122 = arith.truncf %116 : vector<1x32xf32> to vector<1x32xbf16>
    %c0_59 = arith.constant 0 : index
    %c0_60 = arith.constant 0 : index
    %123 = vector.load %arg14[%c0_59, %c0_60] : memref<32x32xbf16, #tpu.memory_space<vmem>>, vector<32x32xbf16>
    %cst_61 = arith.constant dense<0.000000e+00> : vector<1x32xf32>
    %124 = tpu.matmul %122, %123, %cst_61 {dimension_numbers = #tpu.dot_dimension_numbers<[1], [0], [0], [1], [0, 0, 1, 1], [], []>} : vector<1x32xbf16>, vector<32x32xbf16>, vector<1x32xf32> -> vector<1x32xf32>
    %c0_62 = arith.constant 0 : index
    %c0_63 = arith.constant 0 : index
    %125 = vector.load %arg15[%c0_62, %c0_63] : memref<1x32xf32, #tpu.memory_space<vmem>>, vector<1x32xf32>
    %126 = arith.addf %124, %125 : vector<1x32xf32>
    %127 = arith.mulf %126, %126 : vector<1x32xf32>
    %128 = arith.mulf %126, %127 : vector<1x32xf32>
    %cst_64 = arith.constant 4.471500e-02 : f32
    %129 = vector.broadcast %cst_64 : f32 to vector<1x32xf32>
    %130 = arith.mulf %129, %128 : vector<1x32xf32>
    %131 = arith.addf %126, %130 : vector<1x32xf32>
    %cst_65 = arith.constant 0.797884583 : f32
    %132 = vector.broadcast %cst_65 : f32 to vector<1x32xf32>
    %133 = arith.mulf %132, %131 : vector<1x32xf32>
    %134 = math.tanh %133 : vector<1x32xf32>
    %cst_66 = arith.constant 1.000000e+00 : f32
    %135 = vector.broadcast %cst_66 : f32 to vector<1x32xf32>
    %136 = arith.addf %135, %134 : vector<1x32xf32>
    %cst_67 = arith.constant 5.000000e-01 : f32
    %137 = vector.broadcast %cst_67 : f32 to vector<1x32xf32>
    %138 = arith.mulf %137, %136 : vector<1x32xf32>
    %139 = arith.mulf %126, %138 : vector<1x32xf32>
    %140 = arith.truncf %139 : vector<1x32xf32> to vector<1x32xbf16>
    %c0_68 = arith.constant 0 : index
    %c0_69 = arith.constant 0 : index
    %141 = vector.load %arg16[%c0_68, %c0_69] : memref<32x32xbf16, #tpu.memory_space<vmem>>, vector<32x32xbf16>
    %cst_70 = arith.constant dense<0.000000e+00> : vector<1x32xf32>
    %142 = tpu.matmul %140, %141, %cst_70 {dimension_numbers = #tpu.dot_dimension_numbers<[1], [0], [0], [1], [0, 0, 1, 1], [], []>} : vector<1x32xbf16>, vector<32x32xbf16>, vector<1x32xf32> -> vector<1x32xf32>
    %c0_71 = arith.constant 0 : index
    %c0_72 = arith.constant 0 : index
    %143 = vector.load %arg17[%c0_71, %c0_72] : memref<1x32xf32, #tpu.memory_space<vmem>>, vector<1x32xf32>
    %144 = arith.addf %142, %143 : vector<1x32xf32>
    %cst_73 = arith.constant 0.00999999977 : f32
    %145 = vector.broadcast %cst_73 : f32 to vector<1x32xf32>
    %146 = arith.mulf %144, %145 : vector<1x32xf32>
    %147 = arith.addf %116, %146 : vector<1x32xf32>
    %148 = vector.shape_cast %147 : vector<1x32xf32> to vector<1x1x32xf32>
    %c0_74 = arith.constant 0 : index
    %c0_75 = arith.constant 0 : index
    %c0_76 = arith.constant 0 : index
    %149 = vector.load %arg18[%c0_74, %c0_75, %c0_76] : memref<1x17x32xf32, #tpu.memory_space<vmem>>, vector<1x1x32xf32>
    tpu.vector_store %arg18[%c0_74, %c0_75, %c0_76], %148 {strides = array<i32>} : memref<1x17x32xf32, #tpu.memory_space<vmem>>, vector<1x1x32xf32>,
    %150 = arith.truncf %121 : vector<16x32xf32> to vector<16x32xbf16>
    %c0_77 = arith.constant 0 : index
    %c0_78 = arith.constant 0 : index
    %151 = vector.load %arg14[%c0_77, %c0_78] : memref<32x32xbf16, #tpu.memory_space<vmem>>, vector<32x32xbf16>
    %cst_79 = arith.constant dense<0.000000e+00> : vector<16x32xf32>
    %152 = tpu.matmul %150, %151, %cst_79 {dimension_numbers = #tpu.dot_dimension_numbers<[1], [0], [0], [1], [0, 0, 1, 1], [], []>} : vector<16x32xbf16>, vector<32x32xbf16>, vector<16x32xf32> -> vector<16x32xf32>
    %c0_80 = arith.constant 0 : index
    %c0_81 = arith.constant 0 : index
    %153 = vector.load %arg15[%c0_80, %c0_81] : memref<1x32xf32, #tpu.memory_space<vmem>>, vector<1x32xf32>
    %154 = vector.broadcast %153 : vector<1x32xf32> to vector<16x32xf32>
    %155 = arith.addf %152, %154 : vector<16x32xf32>
    %156 = arith.mulf %155, %155 : vector<16x32xf32>
    %157 = arith.mulf %155, %156 : vector<16x32xf32>
    %cst_82 = arith.constant 4.471500e-02 : f32
    %158 = vector.broadcast %cst_82 : f32 to vector<16x32xf32>
    %159 = arith.mulf %158, %157 : vector<16x32xf32>
    %160 = arith.addf %155, %159 : vector<16x32xf32>
    %cst_83 = arith.constant 0.797884583 : f32
    %161 = vector.broadcast %cst_83 : f32 to vector<16x32xf32>
    %162 = arith.mulf %161, %160 : vector<16x32xf32>
    %163 = math.tanh %162 : vector<16x32xf32>
    %cst_84 = arith.constant 1.000000e+00 : f32
    %164 = vector.broadcast %cst_84 : f32 to vector<16x32xf32>
    %165 = arith.addf %164, %163 : vector<16x32xf32>
    %cst_85 = arith.constant 5.000000e-01 : f32
    %166 = vector.broadcast %cst_85 : f32 to vector<16x32xf32>
    %167 = arith.mulf %166, %165 : vector<16x32xf32>
    %168 = arith.mulf %155, %167 : vector<16x32xf32>
    %169 = arith.truncf %168 : vector<16x32xf32> to vector<16x32xbf16>
    %c0_86 = arith.constant 0 : index
    %c0_87 = arith.constant 0 : index
    %170 = vector.load %arg16[%c0_86, %c0_87] : memref<32x32xbf16, #tpu.memory_space<vmem>>, vector<32x32xbf16>
    %cst_88 = arith.constant dense<0.000000e+00> : vector<16x32xf32>
    %171 = tpu.matmul %169, %170, %cst_88 {dimension_numbers = #tpu.dot_dimension_numbers<[1], [0], [0], [1], [0, 0, 1, 1], [], []>} : vector<16x32xbf16>, vector<32x32xbf16>, vector<16x32xf32> -> vector<16x32xf32>
    %c0_89 = arith.constant 0 : index
    %c0_90 = arith.constant 0 : index
    %172 = vector.load %arg17[%c0_89, %c0_90] : memref<1x32xf32, #tpu.memory_space<vmem>>, vector<1x32xf32>
    %173 = vector.broadcast %172 : vector<1x32xf32> to vector<16x32xf32>
    %174 = arith.addf %171, %173 : vector<16x32xf32>
    %cst_91 = arith.constant 0.00999999977 : f32
    %175 = vector.broadcast %cst_91 : f32 to vector<16x32xf32>
    %176 = arith.mulf %174, %175 : vector<16x32xf32>
    %177 = arith.addf %121, %176 : vector<16x32xf32>
    %178 = vector.shape_cast %177 : vector<16x32xf32> to vector<1x16x32xf32>
    %c0_92 = arith.constant 0 : index
    %c1 = arith.constant 1 : index
    %c0_93 = arith.constant 0 : index
    %179 = vector.load %arg18[%c0_92, %c1, %c0_93] : memref<1x17x32xf32, #tpu.memory_space<vmem>>, vector<1x16x32xf32>
    tpu.vector_store %arg18[%c0_92, %c1, %c0_93], %178 {strides = array<i32>} : memref<1x17x32xf32, #tpu.memory_space<vmem>>, vector<1x16x32xf32>,
    return
  }
  func.func @transform_0(%arg0: i32) -> (i32, i32) {
    %c0_i32 = arith.constant 0 : i32
    %c0_i32_0 = arith.constant 0 : i32
    return %arg0, %c0_i32 : i32, i32
  }
  func.func @transform_1(%arg0: i32) -> (i32, i32, i32) {
    %c0_i32 = arith.constant 0 : i32
    %c0_i32_0 = arith.constant 0 : i32
    %c0_i32_1 = arith.constant 0 : i32
    return %arg0, %c0_i32, %c0_i32_0 : i32, i32, i32
  }
  func.func @transform_2(%arg0: i32) -> (i32, i32) {
    %c0_i32 = arith.constant 0 : i32
    %c0_i32_0 = arith.constant 0 : i32
    %c0_i32_1 = arith.constant 0 : i32
    return %c0_i32, %c0_i32_0 : i32, i32
  }
  func.func @transform_3(%arg0: i32) -> (i32, i32) {
    %c0_i32 = arith.constant 0 : i32
    %c0_i32_0 = arith.constant 0 : i32
    %c0_i32_1 = arith.constant 0 : i32
    return %c0_i32, %c0_i32_0 : i32, i32
  }
  func.func @transform_4(%arg0: i32) -> (i32, i32) {
    %c0_i32 = arith.constant 0 : i32
    %c0_i32_0 = arith.constant 0 : i32
    %c0_i32_1 = arith.constant 0 : i32
    return %c0_i32, %c0_i32_0 : i32, i32
  }
  func.func @transform_5(%arg0: i32) -> (i32, i32) {
    %c0_i32 = arith.constant 0 : i32
    %c0_i32_0 = arith.constant 0 : i32
    %c0_i32_1 = arith.constant 0 : i32
    return %c0_i32, %c0_i32_0 : i32, i32
  }
  func.func @transform_6(%arg0: i32) -> (i32, i32) {
    %c0_i32 = arith.constant 0 : i32
    %c0_i32_0 = arith.constant 0 : i32
    %c0_i32_1 = arith.constant 0 : i32
    return %c0_i32, %c0_i32_0 : i32, i32
  }
  func.func @transform_7(%arg0: i32) -> (i32, i32) {
    %c0_i32 = arith.constant 0 : i32
    %c0_i32_0 = arith.constant 0 : i32
    %c0_i32_1 = arith.constant 0 : i32
    return %c0_i32, %c0_i32_0 : i32, i32
  }
  func.func @transform_8(%arg0: i32) -> (i32, i32) {
    %c0_i32 = arith.constant 0 : i32
    %c0_i32_0 = arith.constant 0 : i32
    %c0_i32_1 = arith.constant 0 : i32
    return %c0_i32, %c0_i32_0 : i32, i32
  }
  func.func @transform_9(%arg0: i32) -> (i32, i32) {
    %c0_i32 = arith.constant 0 : i32
    %c0_i32_0 = arith.constant 0 : i32
    %c0_i32_1 = arith.constant 0 : i32
    return %c0_i32, %c0_i32_0 : i32, i32
  }
  func.func @transform_10(%arg0: i32) -> (i32, i32) {
    %c0_i32 = arith.constant 0 : i32
    %c0_i32_0 = arith.constant 0 : i32
    %c0_i32_1 = arith.constant 0 : i32
    return %c0_i32, %c0_i32_0 : i32, i32
  }
  func.func @transform_11(%arg0: i32) -> (i32, i32) {
    %c0_i32 = arith.constant 0 : i32
    %c0_i32_0 = arith.constant 0 : i32
    %c0_i32_1 = arith.constant 0 : i32
    return %c0_i32, %c0_i32_0 : i32, i32
  }
  func.func @transform_12(%arg0: i32) -> (i32, i32) {
    %c0_i32 = arith.constant 0 : i32
    %c0_i32_0 = arith.constant 0 : i32
    %c0_i32_1 = arith.constant 0 : i32
    return %c0_i32, %c0_i32_0 : i32, i32
  }
  func.func @transform_13(%arg0: i32) -> (i32, i32) {
    %c0_i32 = arith.constant 0 : i32
    %c0_i32_0 = arith.constant 0 : i32
    %c0_i32_1 = arith.constant 0 : i32
    return %c0_i32, %c0_i32_0 : i32, i32
  }
  func.func @transform_14(%arg0: i32) -> (i32, i32) {
    %c0_i32 = arith.constant 0 : i32
    %c0_i32_0 = arith.constant 0 : i32
    %c0_i32_1 = arith.constant 0 : i32
    return %c0_i32, %c0_i32_0 : i32, i32
  }
  func.func @transform_15(%arg0: i32) -> (i32, i32) {
    %c0_i32 = arith.constant 0 : i32
    %c0_i32_0 = arith.constant 0 : i32
    %c0_i32_1 = arith.constant 0 : i32
    return %c0_i32, %c0_i32_0 : i32, i32
  }
  func.func @transform_16(%arg0: i32) -> (i32, i32) {
    %c0_i32 = arith.constant 0 : i32
    %c0_i32_0 = arith.constant 0 : i32
    %c0_i32_1 = arith.constant 0 : i32
    return %c0_i32, %c0_i32_0 : i32, i32
  }
  func.func @transform_17(%arg0: i32) -> (i32, i32, i32) {
    %c0_i32 = arith.constant 0 : i32
    %c0_i32_0 = arith.constant 0 : i32
    %c0_i32_1 = arith.constant 0 : i32
    return %arg0, %c0_i32, %c0_i32_0 : i32, i32, i32
  }
}

</mosaic_0001>

<bundles_post_ra>
// kernel: _lambda_.1
= control target key start
LH: loop header
LB: loop body
LE: loop exit
PB: predicated region body
PF: predicated region fallthrough
CT: control target
= control target key end

     0   :  { %s1914_s28 = smov 0   ;;  %s2151_s0 = inlined_call_operand.vmem [shape: bf16[32,144], index: 0, kind: input, shape index: {}]   ;;  %s2152_s1 = inlined_call_operand.vmem [shape: f32[2,17,32], index: 1, kind: input, shape index: {}]   ;;  %s2153_s2 = inlined_call_operand.vmem [shape: bf16[144,128], index: 2, kind: input, shape index: {}]   ;;  %s2154_s3 = inlined_call_operand.vmem [shape: bf16[128,32], index: 3, kind: input, shape index: {}]   ;;  %s2155_s4 = inlined_call_operand.vmem [shape: f32[1,32], index: 4, kind: input, shape index: {}]   ;;  %s2156_s5 = inlined_call_operand.vmem [shape: f32[16,32], index: 5, kind: input, shape index: {}]   ;;  %s2157_s6 = inlined_call_operand.vmem [shape: bf16[32,8], index: 6, kind: input, shape index: {}]   ;;  %s2158_s7 = inlined_call_operand.vmem [shape: f32[1,8], index: 7, kind: input, shape index: {}]   ;;  %s2159_s8 = inlined_call_operand.vmem [shape: f32[1,8], index: 8, kind: input, shape index: {}]   ;;  %s2160_s9 = inlined_call_operand.<no memory space> [shape: f32[1,1], index: 9, kind: input, shape index: {}]   ;;  %s2161_s11 = inlined_call_operand.vmem [shape: bf16[32,8], index: 11, kind: input, shape index: {}]   ;;  %s2162_s12 = inlined_call_operand.vmem [shape: bf16[8,32], index: 12, kind: input, shape index: {}]   ;;  %s2163_s13 = inlined_call_operand.vmem [shape: bf16[32,32], index: 13, kind: input, shape index: {}]   ;;  %s2164_s14 = inlined_call_operand.vmem [shape: f32[1,32], index: 14, kind: input, shape index: {}]   ;;  %s2165_s15 = inlined_call_operand.vmem [shape: bf16[32,32], index: 15, kind: input, shape index: {}]   ;;  %s2166_s16 = inlined_call_operand.vmem [shape: f32[1,32], index: 16, kind: input, shape index: {}]   ;;  %s2167_s17 = inlined_call_operand.vmem [shape: f32[2,17,32], index: 17, kind: output, shape index: {}]   ;;  %s2168_s10 = inlined_call_operand.<no memory space> [shape: f32[1,1], index: 10, kind: input, shape index: {}]  }
   0x1   :  { %2169 = sst [smem:[#allocation4_spill]] %s2151_s0  ;;  %v22_v0 = vstv %s2160_s9  ;;  %v24_v1 = vstv %s2168_s10 }
   0x2   :  { %2170 = sst [smem:[#allocation5_spill]] %s2152_s1  ;;  %23 = vst [vmem:[#allocation2] sm:$0x1] %v22_v0  ;;  %25 = vst [vmem:[#allocation3] sm:$0x1] %v24_v1 }
   0x3 LB: > { %s1920_s29 = sadd.s32 4294967295, %s1813_s28   ;;  %p1565_p0 = scmp.ge.s32.totalorder %s1813_s28, 1  ;;  %s1813_s28 = sphi %s1914_s28, %s31_s28  }
   0x4   : > { %p503_p1 = scmp.lt.s32.totalorder %s1813_s28, 3 }
   0x6   : > { %p504_p2 = pnand %p1565_p0, %p503_p1 }
   0x7   : > { %v1747_v2 = vld [vmem:[%s2153_s2] sm:$0xff] (!%p504_p2)   ;;  %v1815_v3 = vmov (!%p504_p2), 0   ;;  %s1566_s0 = sshll.u32 (!%p504_p2), %s1920_s29, 1  ;;  %v1748_v4 = vld [vmem:[%s2153_s2 + $0x8] sm:$0xff] (!%p504_p2)   ;;  %v1749_v5 = vld [vmem:[%s2153_s2 + $0x10] sm:$0xff] (!%p504_p2)   ;;  %s2171_s23 = sld [smem:[#allocation4_spill]] (!%p504_p2) }
   0x8   : > { %507 = sbr.rel (%p504_p2) target bundleno = 1984 (0x7c0), region = 88  ;;  %666 = vmatprep.subr.bf16.mxu0 (!%p504_p2), %v1815_v3  ;;  %1745 = vset.pattern.permute.xlu1 (!%p504_p2), %v1815_v3  ;;  %p562_p3 = scmp.lt.s32.totalorder (!%p504_p2), %s1566_s0, 3  ;;  %v1750_v6 = vld [vmem:[%s2153_s2 + $0x18] sm:$0xff] (!%p504_p2)   ;;  %vm662_vm0 = vcmask (!%p504_p2), 130048   ;;  %v1751_v8 = vld [vmem:[%s2153_s2 + $0x20] sm:$0xff] (!%p504_p2)   ;;  %v1752_v9 = vld [vmem:[%s2153_s2 + $0x28] sm:$0xff] (!%p504_p2)  }
   0x9   : > { %667 = vmatpush1.bf16.msra.mxu0 (!%p504_p2), %v1747_v2  ;;  %1746 = vset.pattern.permute.xlu0 (!%p504_p2), %v1815_v3  ;;  %v1753_v10 = vld [vmem:[%s2153_s2 + $0x30] sm:$0xff] (!%p504_p2)   ;;  %v1754_v11 = vld [vmem:[%s2153_s2 + $0x38] sm:$0xff] (!%p504_p2)   ;;  %v1755_v12 = vld [vmem:[%s2153_s2 + $0x40] sm:$0xff] (!%p504_p2)   ;;  %v1816_v15 = vmov (!%p504_p2), 0.0   ;;  %vm1817_vm1 = vmmov (!%p504_p2), 0   ;;  %vm859_vm2 = vcmask (!%p504_p2), 261120  }
   0xa   : > { %668 = vmatprep.subr.bf16.mxu0 (!%p504_p2), %v1815_v3  ;;  %v1759_v14 = vld [vmem:[%s2154_s3] sm:$0xff] (!%p504_p2)   ;;  %1651 = vmatprep.subr.bf16.mxu1 (!%p504_p2), %v1816_v15  ;;  %v1760_v16 = vld [vmem:[%s2154_s3 + $0x8] sm:$0xff] (!%p504_p2)   ;;  %v1761_v17 = vld [vmem:[%s2154_s3 + $0x10] sm:$0xff] (!%p504_p2)   ;;  %vm914_vm3 = vcmask (!%p504_p2), 57344   ;;  %vm1011_vm4 = vcmask (!%p504_p2), 64512   ;;  %vm1147_vm5 = vcmask (!%p504_p2), 1043456  }
   0xb   : > { %1652 = vmatpush3.bf16.msra.mxu1 (!%p504_p2), %v1759_v14  ;;  %v1762_v18 = vld [vmem:[%s2154_s3 + $0x18] sm:$0xff] (!%p504_p2)   ;;  %v1763_v19 = vld [vmem:[%s2154_s3 + $0x20] sm:$0xff] (!%p504_p2)   ;;  %v1764_v20 = vld [vmem:[%s2154_s3 + $0x28] sm:$0xff] (!%p504_p2)   ;;  %1667 = vmatprep.mubr.msk.bf16.mxu1 (!%p504_p2), %vm1817_vm1, %v1816_v15  ;;  %p568_p4 = scmp.lt.s32.totalorder (!%p504_p2), %s1920_s29, 1  ;;  %s2172_s30 = sld [smem:[#allocation5_spill]] (!%p504_p2)  ;;  %vm1059_vm6 = vcmask (!%p504_p2), 1046528  }
   0xc   : > { %1653 = vmatprep.subr.bf16.mxu1 (!%p504_p2), %v1816_v15  ;;  %v1765_v21 = vld [vmem:[%s2154_s3 + $0x30] sm:$0xff] (!%p504_p2)   ;;  %v1766_v22 = vld [vmem:[%s2154_s3 + $0x38] sm:$0xff] (!%p504_p2)   ;;  %v1767_v23 = vld [vmem:[%s2157_s6] sm:$0xff] (!%p504_p2)   ;;  %vm1332_vm7 = vcmask (!%p504_p2), 253952  }
   0xd   : > { %669 = vmatpush1.bf16.msra.mxu0 (!%p504_p2), %v1748_v4  ;;  %v1768_v24 = vld [vmem:[%s2157_s6 + $0x8] sm:$0xff] (!%p504_p2)   ;;  %v2008_v48 = vld [vmem:[%s2155_s4] sm:$0x1] (!%p504_p2) }
   0xe   : > { %670 = vmatprep.subr.bf16.mxu0 (!%p504_p2), %v1815_v3  ;;  %v841_v49 = vpack.c.bf16 (!%p504_p2), %v2008_v48, %v2008_v48  ;;  %v831_v51 = vld [vmem:[%s2156_s5] sm:$0xff] (!%p504_p2)  ;;  %v832_v52 = vld [vmem:[%s2156_s5 + $0x8] sm:$0xff] (!%p504_p2) }
   0xf   : > { %s2174_s0 = smov (!%p562_p3, %s1566_s0), 3  ;;  %1654 = vmatpush3.bf16.msra.mxu1 %v1760_v16  ;;  %v846_v59 = vld [vmem:[%s2158_s7] sm:$0x1]  ;;  %s2176_s29 = smov (!%p568_p4, %s1920_s29), 1 }
  0x10   : > { %s1618_s20 = sshll.u32 %s2174_s0, 3  ;;  %1655 = vmatprep.subr.bf16.mxu1 %v1816_v15  ;;  %s1733_s9 = smul.u32 24, %s2176_s29 }
  0x11   : > { %s566_s24 = scalar_lea.vmem %s2171_s23, %s1618_s20  ;;  %671 = vmatpush1.bf16.msra.mxu0 %v1749_v5 }
  0x12   : > { %v1758_v7 = vld [vmem:[%s566_s24 + $0x4] ss:$8 sps:$4 sm:$0xff]   ;;  %672 = vmatprep.subr.bf16.mxu0 %v1815_v3  ;;  %v1756_v13 = vld [vmem:[%s566_s24] ss:$8 sps:$4 sm:$0xff]   ;;  %s572_s18 = scalar_lea.vmem %s2172_s30, %s1733_s9  ;;  %s577_s10 = scalar_lea.vmem %s2167_s17, %s1733_s9 }
  0x13   : > { %1582 = vmatprep.mubr.msk.bf16.mxu0 %vm662_vm0, %v1758_v7  ;;  %1656 = vmatpush3.bf16.msra.mxu1 %v1761_v17 }
  0x14   : > { %1657 = vmatprep.subr.bf16.mxu1 %v1816_v15 }
  0x15   : > { %673 = vmatpush1.bf16.msra.mxu0 %v1750_v6 }
  0x16   : > { %674 = vmatprep.subr.bf16.mxu0 %v1815_v3 }
  0x17   : > { %1658 = vmatpush3.bf16.msra.mxu1 %v1762_v18 }
  0x18   : > { %1659 = vmatprep.subr.bf16.mxu1 %v1816_v15 }
  0x19   : > { %675 = vmatpush1.bf16.msra.mxu0 %v1751_v8 }
  0x1a   : > { %676 = vmatprep.subr.bf16.mxu0 %v1815_v3 }
  0x1b   : > { %1660 = vmatpush3.bf16.msra.mxu1 %v1763_v19 }
  0x1c   : > { %1661 = vmatprep.subr.bf16.mxu1 %v1816_v15 }
  0x1d   : > { %677 = vmatpush1.bf16.msra.mxu0 %v1752_v9  ;;  %v912_v9 = vld [vmem:[%s2159_s8] sm:$0x1] }
  0x1e   : > { %678 = vmatprep.subr.bf16.mxu0 %v1815_v3 }
  0x1f   : > { %1662 = vmatpush3.bf16.msra.mxu1 %v1764_v20 }
  0x20   : > { %1663 = vmatprep.subr.bf16.mxu1 %v1816_v15 }
  0x21   : > { %679 = vmatpush1.bf16.msra.mxu0 %v1753_v10 }
  0x22   : > { %680 = vmatprep.subr.bf16.mxu0 %v1815_v3 }
  0x23   : > { %1664 = vmatpush3.bf16.msra.mxu1 %v1765_v21 }
  0x24   : > { %1665 = vmatprep.subr.bf16.mxu1 %v1816_v15 }
  0x25   : > { %681 = vmatpush1.bf16.msra.mxu0 %v1754_v11 }
  0x26   : > { %682 = vmatprep.subr.bf16.mxu0 %v1815_v3 }
  0x27   : > { %1666 = vmatpush3.bf16.msra.mxu1 %v1766_v22 }
  0x28   : > { %1671 = vmatprep.subr.bf16.mxu1 %v1816_v15 }
  0x29   : > { %683 = vmatpush1.bf16.msra.mxu0 %v1755_v12 }
  0x2a   : > { %1679 = vmatprep.subr.bf16.mxu0 %v1816_v15 }
  0x2c   : > { %699 = vmatmul.mubr.bf16.vlgmr.msra.gmra.mrb[0].mxu0 %v1756_v13  ;;  %v936_v13 = vlaneseq }
  0x2d   : > { %1683 = vmatprep.mubr.msk.bf16.mxu0 %vm1817_vm1, %v1816_v15  ;;  %1680 = vmatpush3.bf16.msra.mxu0 %v1767_v23 }
  0x2e   : > { %1681 = vmatprep.subr.bf16.mxu0 %v1816_v15  ;;  %v937_v14 = vshrl.u32 %v936_v13, 7  ;;  %v1770_v13 = vld [vmem:[%s2161_s11 + $0x8] sm:$0xff]  }
  0x30   : > { %v2036_v16 = vsub.s32 0, %v937_v14  ;;  %v1143_v14 = vld [vmem:[%s2162_s12] sm:$0xf] }
  0x31   : > { %1682 = vmatpush3.bf16.msra.mxu0 %v1768_v24 }
  0x32   : > { %1695 = vmatprep.subr.bf16.mxu0 %v1816_v15  ;;  %v939_v17 = vrot.slane %v846_v59, %v2036_v16 }
  0xff   : > { %v700_v25 = vpop.f32.mrb[0].mxu0 }
 0x100   : > { %v707_v26 = vmul.f32 %v700_v25, %v700_v25  ;;  %v702_v27 = vpop.f32.mrb[1].mxu0 }
 0x101   : > { %v703_v28 = vpop.f32.mrb[2].mxu0 }
 0x102   : > { %v709_v29 = vmul.f32 %v707_v26, %v700_v25  ;;  %v708_v30 = vmul.f32 %v703_v28, %v703_v28  ;;  %v705_v31 = vpop.f32.mrb[3].mxu0 }
 0x104   : > { %v711_v32 = vmul.f32 0.044715, %v709_v29  ;;  %v710_v33 = vmul.f32 %v708_v30, %v703_v28 }
 0x106   : > { %v713_v34 = vadd.f32 %v711_v32, %v700_v25  ;;  %v712_v35 = vmul.f32 0.044715, %v710_v33 }
 0x108   : > { %v715_v36 = vmul.f32 0.7978846, %v713_v34  ;;  %v714_v37 = vadd.f32 %v712_v35, %v703_v28 }
 0x10a   : > { %1779 = vtanh.f32 %v715_v36  ;;  %v716_v38 = vmul.f32 0.7978846, %v714_v37 }
 0x10c   : > { %1781 = vtanh.f32 %v716_v38  ;;  %v1007_v38 = vrot.slane %v912_v9, %v2036_v16 }
 0x114   : > { %v1780_v39 = vpop.eup %1779 }
 0x115   : > { %v719_v40 = vadd.f32 1.0, %v1780_v39 }
 0x116   : > { %v1782_v41 = vpop.eup %1781 }
 0x117   : > { %v721_v42 = vmul.f32 0.5, %v719_v40  ;;  %v720_v43 = vadd.f32 1.0, %v1782_v41 }
 0x119   : > { %v722_v44 = vmul.f32 0.5, %v720_v43  ;;  %v723_v45 = vmul.f32 %v721_v42, %v700_v25 }
 0x11b   : > { %v724_v46 = vmul.f32 %v722_v44, %v703_v28 }
 0x11d   : > { %v725_v47 = vpack.c.bf16 %v724_v46, %v723_v45 }
 0x11f   : > { %1668 = vmatmul.mubr.bf16.vlgmr.msra.gmra.mrb[0].mxu1 %v725_v47  ;;  %v918_v47 = vld [vmem:[#allocation2] sm:$0x1] }
 0x120   : > { %1672 = vmatpush3.bf16.msra.mxu1 %v1767_v23  ;;  %1675 = vmatprep.mubr.msk.bf16.mxu1 %vm1817_vm1, %v1816_v15 }
 0x121   : > { %1673 = vmatprep.subr.bf16.mxu1 %v1816_v15 }
 0x124   : > { %1674 = vmatpush3.bf16.msra.mxu1 %v1768_v24 }
 0x125   : > { %1687 = vmatprep.subr.bf16.mxu1 %v1816_v15 }
 0x127   : > { %1676 = vmatmul.mubr.msk.bf16.vlgmr.msra.gmra.mrb[4].mxu1 %vm859_vm2, %v841_v49 }
 0x128   : > { %1691 = vmatprep.mubr.msk.bf16.mxu1 %vm1817_vm1, %v1816_v15 }
 0x1f2   : > { %v824_v50 = vpop.f32.mrb[0].mxu1 }
 0x1f3   : > { %v1669_v53 = vpop.f32.mrb[1].mxu1  ;;  %v2021_v55 = vadd.f32 %v831_v51, %v824_v50  ;;  %v1022_v51 = vrot.slane %v918_v47, %v2036_v16 }
 0x1f4   : > { %v827_v54 = vpop.f32.mrb[2].mxu1 }
 0x1f5   : > { %v2023_v56 = vadd.f32 %v832_v52, %v827_v54  ;;  %v1670_v57 = vpop.f32.mrb[3].mxu1 }
 0x1f7   : > { %v934_v58 = vpack.c.bf16 %v2023_v56, %v2021_v55 }
 0x1f9   : > { %1684 = vmatmul.mubr.msk.bf16.vlgmr.msra.gmra.mrb[4].mxu0 %vm859_vm2, %v934_v58 }
 0x1fa   : > { %1697 = vmatprep.mubr.msk.bf16.mxu0 %vm1817_vm1, %v1816_v15  ;;  %v897_v60 = vpop.f32.mrb[4].mxu1 }
 0x1fb   : > { %v898_v61 = vadd.f32 %v897_v60, %v846_v59  ;;  %v1677_v62 = vpop.f32.mrb[5].mxu1 }
 0x1fc   : > { %v900_v63 = vpop.f32.mrb[6].mxu1 }
 0x1fd   : > { %v903_v0 = vmul.f32 %v898_v61, %v898_v61  ;;  %v1678_v1 = vpop.f32.mrb[7].mxu1 }
 0x1ff   : > { %v904_v2 = vmul.f32 %v903_v0, %v898_v61 }
 0x201   : > { %v905_v3 = vmul.f32 0.044715, %v904_v2 }
 0x203   : > { %v906_v4 = vadd.f32 %v905_v3, %v898_v61  ;;  %v839_v3 = vld [vmem:[#allocation3] sm:$0x1] }
 0x205   : > { %v907_v5 = vmul.f32 0.7978846, %v906_v4  ;;  %v840_v4 = vmul.f32 0.001, %v839_v3  ;;  %v1776_v3 = vld [vmem:[%s2165_s15 + $0x8] sm:$0xff]  }
 0x207   : > { %1783 = vtanh.f32 %v907_v5  ;;  %v1042_v5 = vrot.slane %v840_v4, %v2036_v16 }
 0x211   : > { %v1784_v6 = vpop.eup %1783 }
 0x212   : > { %v909_v7 = vadd.f32 1.0, %v1784_v6 }
 0x214   : > { %v910_v8 = vmul.f32 0.5, %v909_v7 }
 0x216   : > { %v911_v10 = vmul.f32 %v910_v8, %v898_v61 }
 0x218   : > { %v913_v11 = vmul.f32 %v912_v9, %v911_v10 }
 0x21a   : > { %v915_v12 = vsel %vm914_vm3, %v913_v11, 0.0 }
 0x21b   : > { %916 = vadd.xlane.f32.xlu1 %v915_v12  ;;  %v1769_v12 = vld [vmem:[%s2161_s11] sm:$0xff]  }
 0x21c   : > { %1688 = vmatpush3.bf16.msra.mxu1 %v1769_v12  ;;  %v1608_v12 = vld [vmem:[%s2164_s14] ss:$0 sm:$0xff] }
 0x21d   : > { %1689 = vmatprep.subr.bf16.mxu1 %v1816_v15 }
 0x220   : > { %1690 = vmatpush3.bf16.msra.mxu1 %v1770_v13 }
 0x221   : > { %1701 = vmatprep.subr.bf16.mxu1 %v1816_v15 }
 0x2a8   : > { %v917_v49 = vpop.xlane.xlu1 %916 }
 0x2a9   : > { %v919_v50 = vadd.f32 %v918_v47, %v917_v49 }
 0x2ab   : > { %v1594_v52 = vmul.f32 -1.442695, %v919_v50 }
 0x2cc   : > { %v978_v18 = vpop.f32.mrb[4].mxu0 }
 0x2cd   : > { %v979_v19 = vadd.f32 %v978_v18, %v939_v17  ;;  %v1685_v20 = vpop.f32.mrb[5].mxu0  ;;  %v836_v18 = vld [vmem:[%s572_s18] sm:$0xff] }
 0x2ce   : > { %v981_v21 = vpop.f32.mrb[6].mxu0  ;;  %v1060_v20 = vrot.slane %v836_v18, 1 }
 0x2cf   : > { %v985_v22 = vmul.f32 %v979_v19, %v979_v19  ;;  %v982_v23 = vadd.f32 %v981_v21, %v939_v17  ;;  %v1686_v24 = vpop.f32.mrb[7].mxu0  ;;  %v1149_v17 = vsel %vm1147_vm5, %v1143_v14, 0 }
 0x2d0   : > { %1696 = vmatpush3.bf16.msra.mxu0 %v1149_v17 }
 0x2d1   : > { %v987_v25 = vmul.f32 %v985_v22, %v979_v19  ;;  %v986_v26 = vmul.f32 %v982_v23, %v982_v23  ;;  %1709 = vmatprep.subr.bf16.mxu0 %v1816_v15  ;;  %v838_v22 = vld [vmem:[%s572_s18 + $0x10] sm:$0x1] }
 0x2d2   : > { %v1063_v24 = vrot.slane %v838_v22, 1 }
 0x2d3   : > { %v989_v27 = vmul.f32 0.044715, %v987_v25  ;;  %v988_v28 = vmul.f32 %v986_v26, %v982_v23 }
 0x2d5   : > { %v991_v29 = vadd.f32 %v989_v27, %v979_v19  ;;  %v990_v30 = vmul.f32 0.044715, %v988_v28 }
 0x2d7   : > { %v993_v31 = vmul.f32 0.7978846, %v991_v29  ;;  %v992_v32 = vadd.f32 %v990_v30, %v982_v23 }
 0x2d9   : > { %v994_v33 = vmul.f32 0.7978846, %v992_v32  ;;  %1785 = vtanh.f32 %v993_v31 }
 0x2db   : > { %1787 = vtanh.f32 %v994_v33 }
 0x2dc   : > { %1789 = vpow2.f32 %v1594_v52 }
 0x2e3   : > { %v1786_v34 = vpop.eup %1785 }
 0x2e4   : > { %v997_v35 = vadd.f32 1.0, %v1786_v34 }
 0x2e5   : > { %v1788_v36 = vpop.eup %1787 }
 0x2e6   : > { %v999_v37 = vmul.f32 0.5, %v997_v35  ;;  %v998_v39 = vadd.f32 1.0, %v1788_v36  ;;  %v1790_v61 = vpop.eup %1789 }
 0x2e7   : > { %v923_v63 = vadd.f32 1.0, %v1790_v61 }
 0x2e8   : > { %v1001_v40 = vmul.f32 %v999_v37, %v979_v19  ;;  %v1000_v41 = vmul.f32 0.5, %v998_v39  ;;  %v837_v19 = vld [vmem:[%s572_s18 + $0x8] sm:$0xff] }
 0x2e9   : > { %v1061_v21 = vrot.slane %v837_v19, 1 }
 0x2ea   : > { %v1009_v42 = vmul.f32 %v1007_v38, %v1001_v40  ;;  %v1002_v43 = vmul.f32 %v1000_v41, %v982_v23 }
 0x2eb   : > { %v1062_v23 = vsel %vm1059_vm6, %v1060_v20, %v1061_v21  ;;  %v1064_v27 = vsel %vm1059_vm6, %v1061_v21, %v1063_v24 }
 0x2ec   : > { %v1012_v44 = vsel %vm1011_vm4, %v1009_v42, 0.0  ;;  %v1010_v45 = vmul.f32 %v1007_v38, %v1002_v43 }
 0x2ed   : > { %1013 = vadd.xlane.f32.xlu0 %v1012_v44 }
 0x2ee   : > { %v1015_v46 = vsel %vm1011_vm4, %v1010_v45, 0.0 }
 0x2f1   : > { %1016 = vadd.xlane.f32.xlu0 %v1015_v46 }
 0x37a   : > { %v1014_v53 = vpop.xlane.xlu0 %1013 }
 0x37b   : > { %v1024_v54 = vadd.f32 %v1022_v51, %v1014_v53 }
 0x37d   : > { %v1596_v57 = vmul.f32 -1.442695, %v1024_v54 }
 0x37e   : > { %v1017_v58 = vpop.xlane.xlu0 %1016 }
 0x37f   : > { %1791 = vpow2.f32 %v1596_v57  ;;  %v1025_v59 = vadd.f32 %v1022_v51, %v1017_v58  ;;  %v1772_v51 = vld [vmem:[%s2163_s13 + $0x8] sm:$0xff]  }
 0x381   : > { %v1597_v60 = vmul.f32 -1.442695, %v1025_v59 }
 0x383   : > { %1793 = vpow2.f32 %v1597_v60  ;;  %v1773_v60 = vld [vmem:[%s2163_s13] sm:$0xff]  }
 0x389   : > { %v1792_v62 = vpop.eup %1791 }
 0x38a   : > { %v1032_v0 = vadd.f32 1.0, %v1792_v62 }
 0x38c   : > { %1795 = vrcp.f32 %v1032_v0 }
 0x38d   : > { %v1794_v1 = vpop.eup %1793  ;;  %1797 = vrcp.f32 %v923_v63  ;;  %v1774_v63 = vld [vmem:[%s2163_s13 + $0x8] sm:$0xff]  }
 0x38e   : > { %v1033_v2 = vadd.f32 1.0, %v1794_v1 }
 0x390   : > { %1799 = vrcp.f32 %v1033_v2  ;;  %v1775_v2 = vld [vmem:[%s2165_s15] sm:$0xff]  }
 0x396   : > { %v1796_v6 = vpop.eup %1795 }
 0x397   : > { %v1044_v7 = vmul.f32 %v1796_v6, %v1042_v5  ;;  %v1798_v8 = vpop.eup %1797 }
 0x398   : > { %v926_v10 = vmul.f32 %v1798_v8, %v840_v4  ;;  %v1204_v4 = vld [vmem:[%s2164_s14] sm:$0x1] }
 0x399   : > { %1048 = vperm.xlu1 %1745, %v1044_v7  }
 0x39a   : > { %v1800_v9 = vpop.eup %1799 }
 0x39b   : > { %v1045_v11 = vmul.f32 %v1800_v9, %v1042_v5 }
 0x39d   : > { %929 = vperm.xlu1 %1745, %v926_v10   ;;  %1053 = vperm.xlu0 %1746, %v1045_v11  }
 0x418   : > { %v1049_v25 = vpop.permute.xlu1 %1048 }
 0x419   : > { %v1067_v26 = vmul.f32 %v1062_v23, %v1049_v25 }
 0x41b   : > { %v1069_v29 = vadd.f32 %v1067_v26, %v2021_v55 }
 0x41c   : > { %v1054_v28 = vpop.permute.xlu0 %1053  ;;  %v930_v37 = vpop.permute.xlu1 %929 }
 0x41d   : > { %v1068_v30 = vmul.f32 %v1064_v27, %v1054_v28  ;;  %v1071_v32 = vsel %vm859_vm2, %v1069_v29, 0.0  ;;  %v932_v39 = vmul.f32 %v930_v37, %v836_v18 }
 0x41f   : > { %v1070_v31 = vadd.f32 %v1068_v30, %v2023_v56  ;;  %v933_v42 = vadd.f32 %v932_v39, %v2008_v48  ;;  %v1771_v56 = vld [vmem:[%s2163_s13] sm:$0xff]  }
 0x421   : > { %v1072_v33 = vsel %vm859_vm2, %v1070_v31, 0.0 }
 0x422   : > { %v1073_v34 = vadd.f32 %v1072_v33, %v1071_v32 }
 0x424   : > { %v1074_v35 = vrot.slane %v1073_v34, 4 }
 0x426   : > { %v1075_v36 = vadd.f32 %v1074_v35, %v1073_v34 }
 0x428   : > { %v1076_v38 = vrot.slane %v1075_v36, 2 }
 0x42a   : > { %v1077_v40 = vadd.f32 %v1076_v38, %v1075_v36  ;;  %v1777_v38 = vld [vmem:[%s2165_s15] sm:$0xff]  }
 0x42c   : > { %v1078_v41 = vrot.slane %v1077_v40, 1 }
 0x42e   : > { %v1079_v43 = vadd.f32 %v1078_v41, %v1077_v40 }
 0x430   : > { %v1080_v44 = vadd.f32 %v1079_v43, %v933_v42  ;;  %v1778_v43 = vld [vmem:[%s2165_s15 + $0x8] sm:$0xff]  }
 0x432   : > { %v1081_v55 = vmul.f32 0.05882353, %v1080_v44 }
 0x434   : > { %v1082_v45 = vpack.c.bf16 %v1081_v55, %v1081_v55 }
 0x436   : > { %1692 = vmatmul.mubr.msk.bf16.vlgmr.msra.gmra.mrb[8].mxu1 %vm859_vm2, %v1082_v45 }
 0x437   : > { %1705 = vmatprep.mubr.msk.bf16.mxu1 %vm1817_vm1, %v1816_v15  ;;  %1702 = vmatpush3.bf16.msra.mxu1 %v1771_v56 }
 0x438   : > { %1703 = vmatprep.subr.bf16.mxu1 %v1816_v15 }
 0x43b   : > { %1704 = vmatpush3.bf16.msra.mxu1 %v1772_v51 }
 0x43c   : > { %1717 = vmatprep.subr.bf16.mxu1 %v1816_v15 }
 0x509   : > { %v1136_v46 = vpop.f32.mrb[8].mxu1 }
 0x50a   : > { %v1142_v47 = vpack.c.bf16 %v1136_v46, %v1136_v46  ;;  %v1693_v49 = vpop.f32.mrb[9].mxu1 }
 0x50b   : > { %v1139_v48 = vpop.f32.mrb[10].mxu1  ;;  %v1274_v49 = vld [vmem:[%s2166_s16] sm:$0x1] }
 0x50c   : > { %v1694_v50 = vpop.f32.mrb[11].mxu1  ;;  %1698 = vmatmul.mubr.msk.bf16.vlgmr.msra.gmra.mrb[8].mxu0 %vm1011_vm4, %v1142_v47 }
 0x50d   : > { %1713 = vmatprep.mubr.msk.bf16.mxu0 %vm1817_vm1, %v1816_v15  ;;  %1710 = vmatpush3.bf16.msra.mxu0 %v1775_v2 }
 0x50e   : > { %1711 = vmatprep.subr.bf16.mxu0 %v1816_v15 }
 0x511   : > { %1712 = vmatpush3.bf16.msra.mxu0 %v1776_v3 }
 0x512   : > { %1725 = vmatprep.subr.bf16.mxu0 %v1816_v15 }
 0x5df   : > { %v1185_v52 = vpop.f32.mrb[8].mxu0 }
 0x5e0   : > { %v1191_v53 = vmul.f32 0.01, %v1185_v52  ;;  %v1699_v54 = vpop.f32.mrb[9].mxu0 }
 0x5e1   : > { %v1188_v57 = vpop.f32.mrb[10].mxu0 }
 0x5e2   : > { %v2085_v58 = vadd.f32 %v1191_v53, %v933_v42  ;;  %v1700_v59 = vpop.f32.mrb[11].mxu0  ;;  %v1196_v61 = vrot.slane %v1191_v53, %v2036_v16  ;;  %v1612_v57 = vld [vmem:[%s2166_s16] ss:$0 sm:$0xff] }
 0x5e4   : > { %v1199_v62 = vpack.c.bf16 %v2085_v58, %v2085_v58  ;;  %v2099_v0 = vadd.f32 %v1196_v61, %v1069_v29  ;;  %v2101_v1 = vadd.f32 %v1196_v61, %v1070_v31 }
 0x5e6   : > { %1706 = vmatmul.mubr.msk.bf16.vlgmr.msra.gmra.mrb[12].mxu1 %vm859_vm2, %v1199_v62  ;;  %v1334_v16 = vpack.c.bf16 %v2101_v1, %v2099_v0 }
 0x5e7   : > { %1718 = vmatpush3.bf16.msra.mxu1 %v1773_v60  ;;  %1721 = vmatprep.mubr.msk.bf16.mxu1 %vm1817_vm1, %v1816_v15 }
 0x5e8   : > { %1719 = vmatprep.subr.bf16.mxu1 %v1816_v15 }
 0x5eb   : > { %1720 = vmatpush3.bf16.msra.mxu1 %v1774_v63 }
 0x5ee   : > { %1722 = vmatmul.mubr.msk.bf16.vlgmr.msra.gmra.mrb[16].mxu1 %vm859_vm2, %v1334_v16 }
 0x6b9   : > { %v1254_v5 = vpop.f32.mrb[12].mxu1 }
 0x6ba   : > { %v1255_v6 = vadd.f32 %v1254_v5, %v1204_v4  ;;  %v1707_v7 = vpop.f32.mrb[13].mxu1 }
 0x6bb   : > { %v1257_v8 = vpop.f32.mrb[14].mxu1 }
 0x6bc   : > { %v1260_v9 = vmul.f32 %v1255_v6, %v1255_v6  ;;  %v1708_v10 = vpop.f32.mrb[15].mxu1 }
 0x6be   : > { %v1261_v11 = vmul.f32 %v1260_v9, %v1255_v6 }
 0x6c0   : > { %v1262_v13 = vmul.f32 0.044715, %v1261_v11 }
 0x6c1   : > { %v1395_v14 = vpop.f32.mrb[16].mxu1 }
 0x6c2   : > { %v1263_v17 = vadd.f32 %v1262_v13, %v1255_v6  ;;  %v1396_v18 = vadd.f32 %v1608_v12, %v1395_v14  ;;  %v1723_v19 = vpop.f32.mrb[17].mxu1 }
 0x6c3   : > { %v1398_v20 = vpop.f32.mrb[18].mxu1 }
 0x6c4   : > { %v1264_v21 = vmul.f32 0.7978846, %v1263_v17  ;;  %v1402_v22 = vmul.f32 %v1396_v18, %v1396_v18  ;;  %v1399_v23 = vadd.f32 %v1608_v12, %v1398_v20  ;;  %v1724_v24 = vpop.f32.mrb[19].mxu1 }
 0x6c6   : > { %1801 = vtanh.f32 %v1264_v21  ;;  %v1404_v25 = vmul.f32 %v1402_v22, %v1396_v18  ;;  %v1403_v26 = vmul.f32 %v1399_v23, %v1399_v23 }
 0x6c8   : > { %v1406_v27 = vmul.f32 0.044715, %v1404_v25  ;;  %v1405_v28 = vmul.f32 %v1403_v26, %v1399_v23 }
 0x6ca   : > { %v1408_v29 = vadd.f32 %v1406_v27, %v1396_v18  ;;  %v1407_v30 = vmul.f32 0.044715, %v1405_v28 }
 0x6cc   : > { %v1410_v31 = vmul.f32 0.7978846, %v1408_v29  ;;  %v1409_v32 = vadd.f32 %v1407_v30, %v1399_v23 }
 0x6ce   : > { %1803 = vtanh.f32 %v1410_v31  ;;  %v1411_v33 = vmul.f32 0.7978846, %v1409_v32 }
 0x6d0   : > { %v1802_v34 = vpop.eup %1801  ;;  %1805 = vtanh.f32 %v1411_v33 }
 0x6d1   : > { %v1266_v35 = vadd.f32 1.0, %v1802_v34 }
 0x6d3   : > { %v1267_v36 = vmul.f32 0.5, %v1266_v35 }
 0x6d5   : > { %v1268_v37 = vmul.f32 %v1267_v36, %v1255_v6 }
 0x6d7   : > { %v1269_v39 = vpack.c.bf16 %v1268_v37, %v1268_v37 }
 0x6d8   : > { %v1804_v40 = vpop.eup %1803 }
 0x6d9   : > { %v1414_v41 = vadd.f32 1.0, %v1804_v40  ;;  %1714 = vmatmul.mubr.msk.bf16.vlgmr.msra.gmra.mrb[12].mxu0 %vm859_vm2, %v1269_v39 }
 0x6da   : > { %v1806_v42 = vpop.eup %1805  ;;  %1726 = vmatpush3.bf16.msra.mxu0 %v1777_v38  ;;  %1729 = vmatprep.mubr.msk.bf16.mxu0 %vm1817_vm1, %v1816_v15 }
 0x6db   : > { %v1416_v44 = vmul.f32 0.5, %v1414_v41  ;;  %v1415_v55 = vadd.f32 1.0, %v1806_v42  ;;  %1727 = vmatprep.subr.bf16.mxu0 %v1816_v15 }
 0x6dd   : > { %v1417_v45 = vmul.f32 0.5, %v1415_v55  ;;  %v1418_v56 = vmul.f32 %v1416_v44, %v1396_v18 }
 0x6de   : > { %1728 = vmatpush3.bf16.msra.mxu0 %v1778_v43 }
 0x6df   : > { %v1419_v46 = vmul.f32 %v1417_v45, %v1399_v23 }
 0x6e1   : > { %v1420_v47 = vpack.c.bf16 %v1419_v46, %v1418_v56 }
 0x6e3   : > { %1730 = vmatmul.mubr.msk.bf16.vlgmr.msra.gmra.mrb[16].mxu0 %vm859_vm2, %v1420_v47 }
 0x7ac   : > { %v1324_v48 = vpop.f32.mrb[12].mxu0 }
 0x7ad   : > { %v1325_v50 = vadd.f32 %v1324_v48, %v1274_v49  ;;  %v1715_v51 = vpop.f32.mrb[13].mxu0 }
 0x7ae   : > { %v1327_v52 = vpop.f32.mrb[14].mxu0 }
 0x7af   : > { %v1330_v53 = vmul.f32 0.01, %v1325_v50  ;;  %v1716_v54 = vpop.f32.mrb[15].mxu0 }
 0x7b1   : > { %v1331_v15 = vadd.f32 %v1330_v53, %v2085_v58 }
 0x7b3   : > { %1333 = vst.msk [vmem:[%s577_s10] sm:$0x1] %vm1332_vm7, %v1331_v15 }
 0x7b6   : > { %v1481_v59 = vpop.f32.mrb[16].mxu0 }
 0x7b7   : > { %v1482_v60 = vadd.f32 %v1612_v57, %v1481_v59  ;;  %v1731_v61 = vpop.f32.mrb[17].mxu0 }
 0x7b8   : > { %v1484_v62 = vpop.f32.mrb[18].mxu0 }
 0x7b9   : > { %v1488_v63 = vmul.f32 0.01, %v1482_v60  ;;  %v1485_v16 = vadd.f32 %v1612_v57, %v1484_v62  ;;  %v1732_v2 = vpop.f32.mrb[19].mxu0 }
 0x7bb   : > { %v1490_v3 = vadd.f32 %v1488_v63, %v2099_v0  ;;  %v1489_v4 = vmul.f32 0.01, %v1485_v16 }
 0x7bd   : > { %1492 = vst.msk [vmem:[%s577_s10 + $0x1] sm:$0xff] %vm859_vm2, %v1490_v3  ;;  %v1491_v5 = vadd.f32 %v1489_v4, %v2101_v1 }
 0x7bf   : > { %1493 = vst.msk [vmem:[%s577_s10 + $0x9] sm:$0xff] %vm859_vm2, %v1491_v5 }
 0x7c0 PF: > { %s31_s28 = sadd.s32 1, %s1813_s28  }
 0x7c1   : > { %p28_p5 = scmp.ge.s32.totalorder %s31_s28, 4  }
 0x7c3   :  { %30 = sbr.rel (!%p28_p5) target bundleno = 3 (0x3), region = 121 }

</bundles_post_ra>
